<compile_context>
chip_gen: v5e
topology: v5e:2x2
jax: 0.10.0
libtpu: 0.0.40
codegen_flags: <defaults>
</compile_context>

<pallas_src>
import numpy as np
import jax
import jax.numpy as jnp
from jax.experimental import pallas as pl
from jax.experimental.pallas import tpu as pltpu


# ---------------------------------------------------------------------------
# Host-side static graph structure (mirrors BaseEncoder.__init__).
# ---------------------------------------------------------------------------
def encode_onehot(labels, num_classes):
    eye = np.eye(num_classes, dtype=np.float32)
    return eye[np.asarray(labels, dtype=np.int64)]


def make_edge_structures(num_vars, dtype=np.float32):
    """send/recv index lists, stacked one-hot gather [2,E,N], e2n one-hot [N,E].

    The 1/(num_vars-1) edge2node scale is applied inside the kernels (in f32),
    so the matrices stay exact 0/1 and can safely be stored in bf16.
    """
    edges = np.ones((num_vars, num_vars)) - np.eye(num_vars)
    send_edges, recv_edges = np.where(edges)
    send_oh = encode_onehot(send_edges, num_vars)                  # [E, N]
    recv_oh = encode_onehot(recv_edges, num_vars)                  # [E, N]
    gather_stacked = np.stack([send_oh, recv_oh], axis=0).astype(dtype)  # [2,E,N]
    e2n_onehot = recv_oh.T.astype(dtype)                           # [N, E]
    return send_edges, recv_edges, gather_stacked, e2n_onehot


# ---------------------------------------------------------------------------
# VMEM budget + tile selection (generation- and shape-aware).
# ---------------------------------------------------------------------------
def _round_up(x, m):
    return -(-x // m) * m


def _vmem_budget_bytes():
    """Scoped-VMEM budget: physical minus 16 MiB headroom, capped at 112 MiB.

    v5e/v6e (128 MiB physical) -> 112 MiB; v7x (64 MiB) -> 48 MiB; unknown -> 48 MiB.
    """
    phys = 64 * 1024 * 1024
    try:
        phys = int(pltpu.get_tpu_info().vmem_capacity_bytes)
    except Exception:
        pass
    return max(32 * 1024 * 1024, min(phys - 16 * 1024 * 1024, 112 * 1024 * 1024))


def _lane_tiles(total):
    """Divisors of `total` that are multiples of 128, descending."""
    return [t for t in range(total, 0, -128) if total % t == 0]


def _e_tiles(E):
    """Valid E tiles (e2n block last dim must be a multiple of 128 or full E)."""
    tiles = [E]
    top = (E // 128) * 128
    tiles += [t for t in range(top, 0, -128) if E % t == 0 and t != E]
    return tiles


def _fused_footprint(tE, tBD, N, in_bytes, out_bytes, emit_edges, use_scratch):
    """Conservative double-buffered VMEM footprint of one fused grid step."""
    sub = lambda x: _round_up(max(int(x), 1), 8)      # sublane padding
    lane = lambda x: _round_up(max(int(x), 1), 128)   # lane padding
    f = 2 * 2 * sub(tE) * lane(N) * in_bytes          # gather [2,tE,N]  (x2 buffers)
    f += 2 * sub(N) * lane(tE) * in_bytes             # e2n    [N,tE]
    f += 2 * sub(N) * lane(tBD) * in_bytes            # node   [N,tBD]
    if emit_edges:
        f += 2 * 2 * sub(tE) * lane(tBD) * out_bytes  # edge   [2,tE,tBD]
    f += 2 * 2 * sub(N) * lane(tBD) * out_bytes       # agg    [2,N,tBD]
    if use_scratch:
        f += 2 * sub(N) * lane(tBD) * 4               # f32 accumulator (single)
    return f


def _pick_tiles(E, N, BD_pad, in_bytes, out_bytes, budget, emit_edges, use_scratch):
    bd_tiles = _lane_tiles(BD_pad)
    # Prefer >=2 lane tiles so the leading "parallel" axis can be sharded across
    # TensorCores (v7x megacore); degrade gracefully for small BD.
    split = [t for t in bd_tiles if t <= BD_pad // 2]
    candidates = split if (BD_pad >= 256 and split) else bd_tiles
    for tBD in candidates:                      # largest lane tile first
        for tE in _e_tiles(E):                  # largest E tile first
            if _fused_footprint(tE, tBD, N, in_bytes, out_bytes,
                                emit_edges, use_scratch) <= budget:
                return tE, tBD
    return _e_tiles(E)[-1], candidates[-1]      # smallest tiles as last resort


# ---------------------------------------------------------------------------
# Fused node2edge + edge2node kernel (edge tensor never round-trips HBM).
#   grid = (BD//tBD  [parallel], E//tE  [arbitrary/reduction])
#   inputs : gather (2,tE,N), e2n (N,tE), node (N,tBD)
#   outputs: [edge (2,tE,tBD)] , agg (2,N,tBD)  (agg resident across the E axis)
# ---------------------------------------------------------------------------
def _make_fused_kernel(emit_edges, use_scratch, scale):
    def kernel(*refs):
        gather_ref, e2n_ref, node_ref = refs[0], refs[1], refs[2]
        if emit_edges:
            edge_ref, agg_ref = refs[3], refs[4]
            acc_ref = refs[5] if use_scratch else agg_ref
        else:
            edge_ref, agg_ref = None, refs[3]
            acc_ref = refs[4] if use_scratch else agg_ref

        e = pl.program_id(1)

        @pl.when(e == 0)
        def _():
            acc_ref[...] = jnp.zeros_like(acc_ref)

        node = node_ref[...]                                   # (N, tBD)
        tE = gather_ref.shape[1]
        n = gather_ref.shape[2]
        if tE % 8 == 0:
            # single MXU push for send+recv (free sublane-merge reshape)
            both = jnp.dot(gather_ref[...].reshape(2 * tE, n), node,
                           preferred_element_type=jnp.float32)  # (2*tE, tBD)
            send, recv = both[:tE], both[tE:]
        else:
            send = jnp.dot(gather_ref[0], node, preferred_element_type=jnp.float32)
            recv = jnp.dot(gather_ref[1], node, preferred_element_type=jnp.float32)

        if emit_edges:
            edge_ref[0] = send.astype(edge_ref.dtype)
            edge_ref[1] = recv.astype(edge_ref.dtype)

        e2n = e2n_ref[...]                                      # (N, tE)
        acc_ref[0] += jnp.dot(e2n, send,
                              preferred_element_type=jnp.float32).astype(acc_ref.dtype)
        acc_ref[1] += jnp.dot(e2n, recv,
                              preferred_element_type=jnp.float32).astype(acc_ref.dtype)

        @pl.when(e == pl.num_programs(1) - 1)
        def _():
            agg_ref[...] = (acc_ref[...].astype(jnp.float32) * scale).astype(agg_ref.dtype)

    return kernel


def fused_node2edge_edge2node_flat(node_embeddings, gather_stacked, e2n_onehot, *,
                                   emit_edges=True, vmem_limit_bytes=None):
    """Fused round trip in kernel-native layout (no host-side edge transpose).

    node_embeddings: [B, N, D]
    returns:
      edge_flat [2, E, B*D] (send half / recv half) if emit_edges else None
      agg_flat  [2, N, B*D] = edge2node of each half, scaled by 1/(N-1)
    """
    B, N, D = node_embeddings.shape
    E = gather_stacked.shape[1]
    dtype = node_embeddings.dtype
    BD = B * D
    BD_pad = _round_up(BD, 128)         # lane-dense outputs (unmasked stores)

    if vmem_limit_bytes is None:
        vmem_limit_bytes = _vmem_budget_bytes()

    node_flat = jnp.transpose(node_embeddings, (1, 0, 2)).reshape(N, BD)
    if BD_pad != BD:
        node_flat = jnp.pad(node_flat, ((0, 0), (0, BD_pad - BD)))

    gather = gather_stacked.astype(dtype)   # exact 0/1 in any dtype (incl. bf16)
    e2n = e2n_onehot.astype(dtype)

    out_dtype = dtype
    use_scratch = jnp.dtype(out_dtype) != jnp.dtype(jnp.float32)
    in_bytes = jnp.dtype(dtype).itemsize
    out_bytes = jnp.dtype(out_dtype).itemsize
    tE, tBD = _pick_tiles(E, N, BD_pad, in_bytes, out_bytes,
                          int(vmem_limit_bytes * 0.9), emit_edges, use_scratch)
    grid = (BD_pad // tBD, E // tE)
    scale = 1.0 / float(N - 1)

    in_specs = [
        pl.BlockSpec((2, tE, N), lambda bd, e: (0, e, 0)),
        pl.BlockSpec((N, tE), lambda bd, e: (0, e)),
        pl.BlockSpec((N, tBD), lambda bd, e: (0, bd)),
    ]
    agg_spec = pl.BlockSpec((2, N, tBD), lambda bd, e: (0, 0, bd))
    agg_shape = jax.ShapeDtypeStruct((2, N, BD_pad), out_dtype)
    if emit_edges:
        out_shape = (jax.ShapeDtypeStruct((2, E, BD_pad), out_dtype), agg_shape)
        out_specs = (pl.BlockSpec((2, tE, tBD), lambda bd, e: (0, e, bd)), agg_spec)
    else:
        out_shape = agg_shape
        out_specs = agg_spec

    scratch_shapes = [pltpu.VMEM((2, N, tBD), jnp.float32)] if use_scratch else []

    result = pl.pallas_call(
        _make_fused_kernel(emit_edges, use_scratch, scale),
        out_shape=out_shape,
        grid_spec=pltpu.PrefetchScalarGridSpec(
            num_scalar_prefetch=0,
            grid=grid,
            in_specs=in_specs,
            out_specs=out_specs,
            scratch_shapes=scratch_shapes),
        compiler_params=pltpu.CompilerParams(
            dimension_semantics=("parallel", "arbitrary"),
            vmem_limit_bytes=int(vmem_limit_bytes)),
    )(gather, e2n, node_flat)

    if emit_edges:
        edge_flat, agg_flat = result
    else:
        edge_flat, agg_flat = None, result

    if BD_pad != BD:
        # TODO(synk): arrange B*D % 128 == 0 upstream to avoid this slice-back.
        if edge_flat is not None:
            edge_flat = edge_flat[:, :, :BD]
        agg_flat = agg_flat[:, :, :BD]
    return edge_flat, agg_flat


# ---------------------------------------------------------------------------
# Native-layout -> PyTorch-layout converters (only used by the parity wrappers).
# ---------------------------------------------------------------------------
def edge_flat_to_torch_layout(edge_flat, B, D):
    _, E, _ = edge_flat.shape
    return jnp.transpose(edge_flat.reshape(2, E, B, D), (2, 1, 0, 3)).reshape(B, E, 2 * D)


def agg_flat_to_torch_layout(agg_flat, B, D):
    _, N, _ = agg_flat.shape
    return jnp.transpose(agg_flat.reshape(2, N, B, D), (2, 1, 0, 3)).reshape(B, N, 2 * D)


def node2edge_edge2node(node_embeddings, gather_stacked, e2n_onehot, **kw):
    """PyTorch-layout fused round trip: returns ([B,E,2D], [B,N,2D])."""
    B, _, D = node_embeddings.shape
    edge_flat, agg_flat = fused_node2edge_edge2node_flat(
        node_embeddings, gather_stacked, e2n_onehot, emit_edges=True, **kw)
    return (edge_flat_to_torch_layout(edge_flat, B, D),
            agg_flat_to_torch_layout(agg_flat, B, D))


# ---------------------------------------------------------------------------
# Standalone node2edge: [B, N, D] -> [B, E, 2D]
# ---------------------------------------------------------------------------
def _node2edge_kernel(gather_ref, node_ref, edge_ref):
    node = node_ref[...]
    tE = gather_ref.shape[1]
    n = gather_ref.shape[2]
    if tE % 8 == 0:
        both = jnp.dot(gather_ref[...].reshape(2 * tE, n), node,
                       preferred_element_type=jnp.float32)
        edge_ref[0] = both[:tE].astype(edge_ref.dtype)
        edge_ref[1] = both[tE:].astype(edge_ref.dtype)
    else:
        edge_ref[0] = jnp.dot(gather_ref[0], node,
                              preferred_element_type=jnp.float32).astype(edge_ref.dtype)
        edge_ref[1] = jnp.dot(gather_ref[1], node,
                              preferred_element_type=jnp.float32).astype(edge_ref.dtype)


def node2edge_flat(node_embeddings, gather_stacked, *, vmem_limit_bytes=None):
    B, N, D = node_embeddings.shape
    E = gather_stacked.shape[1]
    dtype = node_embeddings.dtype
    BD = B * D
    BD_pad = _round_up(BD, 128)
    if vmem_limit_bytes is None:
        vmem_limit_bytes = _vmem_budget_bytes()

    node_flat = jnp.transpose(node_embeddings, (1, 0, 2)).reshape(N, BD)
    if BD_pad != BD:
        node_flat = jnp.pad(node_flat, ((0, 0), (0, BD_pad - BD)))
    gather = gather_stacked.astype(dtype)

    itemsize = jnp.dtype(dtype).itemsize
    tE, tBD = _pick_tiles(E, N, BD_pad, itemsize, itemsize,
                          int(vmem_limit_bytes * 0.9),
                          emit_edges=True, use_scratch=False)

    edge_flat = pl.pallas_call(
        _node2edge_kernel,
        out_shape=jax.ShapeDtypeStruct((2, E, BD_pad), dtype),
        grid_spec=pltpu.PrefetchScalarGridSpec(
            num_scalar_prefetch=0,
            grid=(BD_pad // tBD, E // tE),
            in_specs=[pl.BlockSpec((2, tE, N), lambda bd, e: (0, e, 0)),
                      pl.BlockSpec((N, tBD), lambda bd, e: (0, bd))],
            out_specs=pl.BlockSpec((2, tE, tBD), lambda bd, e: (0, e, bd))),
        compiler_params=pltpu.CompilerParams(
            dimension_semantics=("parallel", "parallel"),
            vmem_limit_bytes=int(vmem_limit_bytes)),
    )(gather, node_flat)

    if BD_pad != BD:
        edge_flat = edge_flat[:, :, :BD]
    return edge_flat


def node2edge(node_embeddings, gather_stacked, **kw):
    B, _, D = node_embeddings.shape
    return edge_flat_to_torch_layout(node2edge_flat(node_embeddings, gather_stacked, **kw), B, D)


# ---------------------------------------------------------------------------
# Standalone edge2node: [B, E, F] -> [B, N, F]   (scale 1/(N-1) applied in-kernel)
# ---------------------------------------------------------------------------
def _make_edge2node_kernel(use_scratch, scale):
    def kernel(*refs):
        if use_scratch:
            e2n_ref, edge_ref, out_ref, acc_ref = refs
        else:
            e2n_ref, edge_ref, out_ref = refs
            acc_ref = out_ref
        e = pl.program_id(1)

        @pl.when(e == 0)
        def _():
            acc_ref[...] = jnp.zeros_like(acc_ref)

        acc_ref[...] += jnp.dot(e2n_ref[...], edge_ref[...],
                                preferred_element_type=jnp.float32).astype(acc_ref.dtype)

        @pl.when(e == pl.num_programs(1) - 1)
        def _():
            out_ref[...] = (acc_ref[...].astype(jnp.float32) * scale).astype(out_ref.dtype)

    return kernel


def edge2node(edge_embeddings, e2n_onehot, num_vars, *, vmem_limit_bytes=None):
    B, E, F = edge_embeddings.shape
    N = e2n_onehot.shape[0]
    dtype = edge_embeddings.dtype
    BF = B * F
    BF_pad = _round_up(BF, 128)
    if vmem_limit_bytes is None:
        vmem_limit_bytes = _vmem_budget_bytes()

    edge_flat = jnp.transpose(edge_embeddings, (1, 0, 2)).reshape(E, BF)
    if BF_pad != BF:
        edge_flat = jnp.pad(edge_flat, ((0, 0), (0, BF_pad - BF)))
    e2n = e2n_onehot.astype(dtype)

    use_scratch = jnp.dtype(dtype) != jnp.dtype(jnp.float32)
    itemsize = jnp.dtype(dtype).itemsize
    tE, tBF = _pick_tiles(E, N, BF_pad, itemsize, itemsize,
                          int(vmem_limit_bytes * 0.9),
                          emit_edges=True, use_scratch=use_scratch)
    scratch_shapes = [pltpu.VMEM((N, tBF), jnp.float32)] if use_scratch else []

    out_flat = pl.pallas_call(
        _make_edge2node_kernel(use_scratch, 1.0 / float(num_vars - 1)),
        out_shape=jax.ShapeDtypeStruct((N, BF_pad), dtype),
        grid_spec=pltpu.PrefetchScalarGridSpec(
            num_scalar_prefetch=0,
            grid=(BF_pad // tBF, E // tE),
            in_specs=[pl.BlockSpec((N, tE), lambda bf, e: (0, e)),
                      pl.BlockSpec((tE, tBF), lambda bf, e: (e, bf))],
            out_specs=pl.BlockSpec((N, tBF), lambda bf, e: (0, bf)),
            scratch_shapes=scratch_shapes),
        compiler_params=pltpu.CompilerParams(
            dimension_semantics=("parallel", "arbitrary"),
            vmem_limit_bytes=int(vmem_limit_bytes)),
    )(e2n, edge_flat)

    if BF_pad != BF:
        out_flat = out_flat[:, :BF]
    return jnp.transpose(out_flat.reshape(N, B, F), (1, 0, 2))


# ---------------------------------------------------------------------------
# Pure-JAX references (mirror the PyTorch indexing semantics exactly).
# ---------------------------------------------------------------------------
def node2edge_ref(node_embeddings, send_edges, recv_edges):
    send_embed = node_embeddings[:, send_edges, :]
    recv_embed = node_embeddings[:, recv_edges, :]
    return jnp.concatenate([send_embed, recv_embed], axis=2)


def edge2node_ref(edge_embeddings, e2n_onehot, num_vars):
    return jnp.matmul(e2n_onehot, edge_embeddings) / (num_vars - 1)


if __name__ == "__main__":
    num_vars = 4          # N  -> E = N*(N-1) = 12
    batch = 2             # B
    embed = 64            # D  -> B*D = 128 (lane-dense, no padding needed)

    send_edges, recv_edges, gather_np, e2n_np = make_edge_structures(num_vars)
    gather_stacked = jnp.asarray(gather_np)     # [2, E, N]
    e2n_onehot = jnp.asarray(e2n_np)            # [N, E] exact 0/1

    key = jax.random.PRNGKey(0)
    node_embeddings = jax.random.normal(key, (batch, num_vars, embed), jnp.float32)

    # References of the PyTorch semantics.
    edge_ref = node2edge_ref(node_embeddings,
                             jnp.asarray(send_edges), jnp.asarray(recv_edges))
    node_ref = edge2node_ref(edge_ref, e2n_onehot, num_vars)

    # 1) Fused round trip (edge tensor emitted + aggregate).
    edge_emb, node_agg = node2edge_edge2node(node_embeddings, gather_stacked, e2n_onehot)
    jax.block_until_ready((edge_emb, node_agg))
    np.testing.assert_allclose(np.asarray(edge_emb), np.asarray(edge_ref), rtol=1e-5, atol=1e-5)
    np.testing.assert_allclose(np.asarray(node_agg), np.asarray(node_ref), rtol=1e-5, atol=1e-5)

    # 2) Aggregate-only fused variant (skips the dominant edge HBM writeback).
    _, agg_flat = fused_node2edge_edge2node_flat(
        node_embeddings, gather_stacked, e2n_onehot, emit_edges=False)
    node_agg2 = agg_flat_to_torch_layout(agg_flat, batch, embed)
    jax.block_until_ready(node_agg2)
    np.testing.assert_allclose(np.asarray(node_agg2), np.asarray(node_ref), rtol=1e-5, atol=1e-5)

    # 3) Standalone module methods node2edge / edge2node.
    edge_emb_s = node2edge(node_embeddings, gather_stacked)
    node_agg_s = edge2node(edge_emb_s, e2n_onehot, num_vars)
    jax.block_until_ready(node_agg_s)
    np.testing.assert_allclose(np.asarray(edge_emb_s), np.asarray(edge_ref), rtol=1e-5, atol=1e-5)
    np.testing.assert_allclose(np.asarray(node_agg_s), np.asarray(node_ref), rtol=1e-5, atol=1e-5)

    # 4) Non-128-multiple B*D exercises the lane-padding path.
    node_small = jax.random.normal(jax.random.PRNGKey(1), (batch, num_vars, 32), jnp.float32)
    edge_small, agg_small = node2edge_edge2node(node_small, gather_stacked, e2n_onehot)
    jax.block_until_ready((edge_small, agg_small))
    edge_small_ref = node2edge_ref(node_small, jnp.asarray(send_edges), jnp.asarray(recv_edges))
    agg_small_ref = edge2node_ref(edge_small_ref, e2n_onehot, num_vars)
    np.testing.assert_allclose(np.asarray(edge_small), np.asarray(edge_small_ref), rtol=1e-5, atol=1e-5)
    np.testing.assert_allclose(np.asarray(agg_small), np.asarray(agg_small_ref), rtol=1e-5, atol=1e-5)

    # 5) bf16 path (halves HBM traffic of the large operands; structural
    #    matrices stay exact 0/1 and the 1/(N-1) scale is applied in f32).
    node_bf16 = node_embeddings.astype(jnp.bfloat16)
    edge_bf, agg_bf = node2edge_edge2node(node_bf16, gather_stacked, e2n_onehot)
    jax.block_until_ready((edge_bf, agg_bf))
    np.testing.assert_allclose(np.asarray(edge_bf, dtype=np.float32), np.asarray(edge_ref),
                               rtol=2e-2, atol=2e-2)
    np.testing.assert_allclose(np.asarray(agg_bf, dtype=np.float32), np.asarray(node_ref),
                               rtol=2e-2, atol=2e-2)

    print("KERNEL_OK")
</pallas_src>

<mosaic_0001>
module attributes {stable_mosaic.version = 11 : i64} {
  func.func @kernel(%arg0: i32, %arg1: i32, %arg2: memref<2x12x4xf32, #tpu.memory_space<vmem>>, %arg3: memref<4x12xf32, #tpu.memory_space<vmem>>, %arg4: memref<4x128xf32, #tpu.memory_space<vmem>>, %arg5: memref<2x12x128xf32, #tpu.memory_space<vmem>>, %arg6: memref<2x4x128xf32, #tpu.memory_space<vmem>>) attributes {dimension_semantics = [#tpu.dimension_semantics<parallel>, #tpu.dimension_semantics<arbitrary>], iteration_bounds = array<i64: 1, 1>, scalar_prefetch = 0 : i64, scratch_operands = 0 : i64, tpu.core_type = #tpu.core_type<tc>, window_params = [{transform_indices = @transform_0, window_bounds = array<i64: 2, 12, 4>}, {transform_indices = @transform_1, window_bounds = array<i64: 4, 12>}, {transform_indices = @transform_2, window_bounds = array<i64: 4, 128>}, {transform_indices = @transform_3, window_bounds = array<i64: 2, 12, 128>}, {transform_indices = @transform_4, window_bounds = array<i64: 2, 4, 128>}]} {
    %c0_i32 = arith.constant 0 : i32
    %0 = arith.cmpi eq, %arg1, %c0_i32 : i32
    %1 = arith.extui %0 : i1 to i32
    %c0_i32_0 = arith.constant 0 : i32
    %2 = arith.cmpi ne, %1, %c0_i32_0 : i32
    scf.if %2 {
      %cst_32 = arith.constant 0.000000e+00 : f32
      %34 = vector.broadcast %cst_32 : f32 to vector<2x4x128xf32>
      %c0_33 = arith.constant 0 : index
      %c0_34 = arith.constant 0 : index
      %c0_35 = arith.constant 0 : index
      %35 = vector.load %arg6[%c0_33, %c0_34, %c0_35] : memref<2x4x128xf32, #tpu.memory_space<vmem>>, vector<2x4x128xf32>
      tpu.vector_store %arg6[%c0_33, %c0_34, %c0_35], %34 {strides = array<i32>} : memref<2x4x128xf32, #tpu.memory_space<vmem>>, vector<2x4x128xf32>,
    } else {
    }
    %c0 = arith.constant 0 : index
    %c0_1 = arith.constant 0 : index
    %3 = vector.load %arg4[%c0, %c0_1] : memref<4x128xf32, #tpu.memory_space<vmem>>, vector<4x128xf32>
    %c0_2 = arith.constant 0 : index
    %c0_3 = arith.constant 0 : index
    %c0_4 = arith.constant 0 : index
    %4 = vector.load %arg2[%c0_2, %c0_3, %c0_4] : memref<2x12x4xf32, #tpu.memory_space<vmem>>, vector<1x12x4xf32>
    %5 = vector.shape_cast %4 : vector<1x12x4xf32> to vector<12x4xf32>
    %cst = arith.constant dense<0.000000e+00> : vector<12x128xf32>
    %6 = tpu.matmul %5, %3, %cst {dimension_numbers = #tpu.dot_dimension_numbers<[1], [0], [0], [1], [0, 0, 1, 1], [], []>} : vector<12x4xf32>, vector<4x128xf32>, vector<12x128xf32> -> vector<12x128xf32>
    %c1 = arith.constant 1 : index
    %c0_5 = arith.constant 0 : index
    %c0_6 = arith.constant 0 : index
    %7 = vector.load %arg2[%c1, %c0_5, %c0_6] : memref<2x12x4xf32, #tpu.memory_space<vmem>>, vector<1x12x4xf32>
    %8 = vector.shape_cast %7 : vector<1x12x4xf32> to vector<12x4xf32>
    %cst_7 = arith.constant dense<0.000000e+00> : vector<12x128xf32>
    %9 = tpu.matmul %8, %3, %cst_7 {dimension_numbers = #tpu.dot_dimension_numbers<[1], [0], [0], [1], [0, 0, 1, 1], [], []>} : vector<12x4xf32>, vector<4x128xf32>, vector<12x128xf32> -> vector<12x128xf32>
    %c0_8 = arith.constant 0 : index
    %c0_9 = arith.constant 0 : index
    %c0_10 = arith.constant 0 : index
    %10 = vector.load %arg5[%c0_8, %c0_9, %c0_10] : memref<2x12x128xf32, #tpu.memory_space<vmem>>, vector<1x12x128xf32>
    %11 = vector.shape_cast %10 : vector<1x12x128xf32> to vector<12x128xf32>
    %12 = vector.shape_cast %6 : vector<12x128xf32> to vector<1x12x128xf32>
    tpu.vector_store %arg5[%c0_8, %c0_9, %c0_10], %12 {strides = array<i32>} : memref<2x12x128xf32, #tpu.memory_space<vmem>>, vector<1x12x128xf32>,
    %c1_11 = arith.constant 1 : index
    %c0_12 = arith.constant 0 : index
    %c0_13 = arith.constant 0 : index
    %13 = vector.load %arg5[%c1_11, %c0_12, %c0_13] : memref<2x12x128xf32, #tpu.memory_space<vmem>>, vector<1x12x128xf32>
    %14 = vector.shape_cast %13 : vector<1x12x128xf32> to vector<12x128xf32>
    %15 = vector.shape_cast %9 : vector<12x128xf32> to vector<1x12x128xf32>
    tpu.vector_store %arg5[%c1_11, %c0_12, %c0_13], %15 {strides = array<i32>} : memref<2x12x128xf32, #tpu.memory_space<vmem>>, vector<1x12x128xf32>,
    %c0_14 = arith.constant 0 : index
    %c0_15 = arith.constant 0 : index
    %16 = vector.load %arg3[%c0_14, %c0_15] : memref<4x12xf32, #tpu.memory_space<vmem>>, vector<4x12xf32>
    %c0_16 = arith.constant 0 : index
    %c0_17 = arith.constant 0 : index
    %c0_18 = arith.constant 0 : index
    %17 = vector.load %arg6[%c0_16, %c0_17, %c0_18] : memref<2x4x128xf32, #tpu.memory_space<vmem>>, vector<1x4x128xf32>
    %18 = vector.shape_cast %17 : vector<1x4x128xf32> to vector<4x128xf32>
    %cst_19 = arith.constant dense<0.000000e+00> : vector<4x128xf32>
    %19 = tpu.matmul %16, %6, %cst_19 {dimension_numbers = #tpu.dot_dimension_numbers<[1], [0], [0], [1], [0, 0, 1, 1], [], []>} : vector<4x12xf32>, vector<12x128xf32>, vector<4x128xf32> -> vector<4x128xf32>
    %20 = arith.addf %18, %19 : vector<4x128xf32>
    %c0_20 = arith.constant 0 : index
    %c0_21 = arith.constant 0 : index
    %c0_22 = arith.constant 0 : index
    %21 = vector.load %arg6[%c0_20, %c0_21, %c0_22] : memref<2x4x128xf32, #tpu.memory_space<vmem>>, vector<1x4x128xf32>
    %22 = vector.shape_cast %21 : vector<1x4x128xf32> to vector<4x128xf32>
    %23 = vector.shape_cast %20 : vector<4x128xf32> to vector<1x4x128xf32>
    tpu.vector_store %arg6[%c0_20, %c0_21, %c0_22], %23 {strides = array<i32>} : memref<2x4x128xf32, #tpu.memory_space<vmem>>, vector<1x4x128xf32>,
    %c1_23 = arith.constant 1 : index
    %c0_24 = arith.constant 0 : index
    %c0_25 = arith.constant 0 : index
    %24 = vector.load %arg6[%c1_23, %c0_24, %c0_25] : memref<2x4x128xf32, #tpu.memory_space<vmem>>, vector<1x4x128xf32>
    %25 = vector.shape_cast %24 : vector<1x4x128xf32> to vector<4x128xf32>
    %cst_26 = arith.constant dense<0.000000e+00> : vector<4x128xf32>
    %26 = tpu.matmul %16, %9, %cst_26 {dimension_numbers = #tpu.dot_dimension_numbers<[1], [0], [0], [1], [0, 0, 1, 1], [], []>} : vector<4x12xf32>, vector<12x128xf32>, vector<4x128xf32> -> vector<4x128xf32>
    %27 = arith.addf %25, %26 : vector<4x128xf32>
    %c1_27 = arith.constant 1 : index
    %c0_28 = arith.constant 0 : index
    %c0_29 = arith.constant 0 : index
    %28 = vector.load %arg6[%c1_27, %c0_28, %c0_29] : memref<2x4x128xf32, #tpu.memory_space<vmem>>, vector<1x4x128xf32>
    %29 = vector.shape_cast %28 : vector<1x4x128xf32> to vector<4x128xf32>
    %30 = vector.shape_cast %27 : vector<4x128xf32> to vector<1x4x128xf32>
    tpu.vector_store %arg6[%c1_27, %c0_28, %c0_29], %30 {strides = array<i32>} : memref<2x4x128xf32, #tpu.memory_space<vmem>>, vector<1x4x128xf32>,
    %c0_i32_30 = arith.constant 0 : i32
    %31 = arith.cmpi eq, %arg1, %c0_i32_30 : i32
    %32 = arith.extui %31 : i1 to i32
    %c0_i32_31 = arith.constant 0 : i32
    %33 = arith.cmpi ne, %32, %c0_i32_31 : i32
    scf.if %33 {
      %c0_32 = arith.constant 0 : index
      %c0_33 = arith.constant 0 : index
      %c0_34 = arith.constant 0 : index
      %34 = vector.load %arg6[%c0_32, %c0_33, %c0_34] : memref<2x4x128xf32, #tpu.memory_space<vmem>>, vector<2x4x128xf32>
      %cst_35 = arith.constant 0.333333343 : f32
      %35 = vector.broadcast %cst_35 : f32 to vector<2x4x128xf32>
      %36 = arith.mulf %34, %35 : vector<2x4x128xf32>
      %c0_36 = arith.constant 0 : index
      %c0_37 = arith.constant 0 : index
      %c0_38 = arith.constant 0 : index
      %37 = vector.load %arg6[%c0_36, %c0_37, %c0_38] : memref<2x4x128xf32, #tpu.memory_space<vmem>>, vector<2x4x128xf32>
      tpu.vector_store %arg6[%c0_36, %c0_37, %c0_38], %36 {strides = array<i32>} : memref<2x4x128xf32, #tpu.memory_space<vmem>>, vector<2x4x128xf32>,
    } else {
    }
    return
  }
  func.func @transform_0(%arg0: i32, %arg1: i32) -> (i32, i32, i32) {
    %c0_i32 = arith.constant 0 : i32
    %c0_i32_0 = arith.constant 0 : i32
    %c0_i32_1 = arith.constant 0 : i32
    return %c0_i32, %arg1, %c0_i32_0 : i32, i32, i32
  }
  func.func @transform_1(%arg0: i32, %arg1: i32) -> (i32, i32) {
    %c0_i32 = arith.constant 0 : i32
    %c0_i32_0 = arith.constant 0 : i32
    return %c0_i32, %arg1 : i32, i32
  }
  func.func @transform_2(%arg0: i32, %arg1: i32) -> (i32, i32) {
    %c0_i32 = arith.constant 0 : i32
    %c0_i32_0 = arith.constant 0 : i32
    return %c0_i32, %arg0 : i32, i32
  }
  func.func @transform_3(%arg0: i32, %arg1: i32) -> (i32, i32, i32) {
    %c0_i32 = arith.constant 0 : i32
    %c0_i32_0 = arith.constant 0 : i32
    return %c0_i32, %arg1, %arg0 : i32, i32, i32
  }
  func.func @transform_4(%arg0: i32, %arg1: i32) -> (i32, i32, i32) {
    %c0_i32 = arith.constant 0 : i32
    %c0_i32_0 = arith.constant 0 : i32
    %c0_i32_1 = arith.constant 0 : i32
    return %c0_i32, %c0_i32_0, %arg0 : i32, i32, i32
  }
}

</mosaic_0001>

<bundles_post_ra>
// kernel: tpu_custom_call.1
= control target key start
LH: loop header
LB: loop body
LE: loop exit
PB: predicated region body
PF: predicated region fallthrough
CT: control target
= control target key end

     0   :  { %vm33_vm0 = vcmask 1043456   ;;  %vm26_vm1 = vcmask 31744   ;;  %s296_s0 = inlined_call_operand.vmem [shape: f32[2,12,4], index: 0, kind: input, shape index: {}]   ;;  %s297_s1 = inlined_call_operand.vmem [shape: f32[4,12], index: 1, kind: input, shape index: {}]   ;;  %s298_s2 = inlined_call_operand.vmem [shape: f32[4,128], index: 2, kind: input, shape index: {}]   ;;  %s299_s3 = inlined_call_operand.vmem [shape: f32[2,12,128], index: 3, kind: output, shape index: {0}]   ;;  %s300_s4 = inlined_call_operand.hbm [shape: f32[2,4,128], index: 4, kind: output, shape index: {1}]  }
   0x1   :  { %v23_v0 = vld [vmem:[%s298_s2] sm:$0xf]  ;;  %v189_v2 = vld [vmem:[%s296_s0 + $0x10] sm:$0xff] }
   0x2   :  { %v24_v1 = vld [vmem:[%s296_s0] sm:$0xff]  ;;  %186 = vmatpush.msk.msra.mxu0 %vm33_vm0, %v23_v0  ;;  %191 = vmatpush.msk.msra.mxu1 %vm33_vm0, %v23_v0 }
   0x3   :  { %10 = vsyncpa [#allocation3], 0  ;;  %187 = vmatmul.msk.f32.vlgmr.msra.gmra.mxu0 %vm26_vm1, %v24_v1  ;;  %192 = vmatmul.msk.f32.vlgmr.msra.gmra.mxu1 %vm26_vm1, %v189_v2  ;;  %v25_v3 = vld [vmem:[%s296_s0 + $0x8] sm:$0xf]  ;;  %v190_v4 = vld [vmem:[%s296_s0 + $0x18] sm:$0xf] }
   0x4   :  { %v230_v5 = vmov 0.0   ;;  %v97_v10 = vld [vmem:[%s297_s1] sm:$0xf]  ;;  %vm99_vm2 = vcmask 97280   ;;  %s231_s7 = smov [#allocation2]   ;;  %s172_s10 = sshll.u32 %s300_s4, 4  ;;  %s173_s10 = int_to_ptr.hbm [resolvable:$true] %s172_s10 }
   0x5   :  { %21 = vst [vmem:[#allocation2] sm:$0xf] %v230_v5  ;;  %s170_s8 = sshll.u32 %s231_s7, 4  ;;  %s233_s11 = smov 4   ;;  %s171_s8 = int_to_ptr.vmem [resolvable:$true] %s170_s8 }
   0x6   :  { %22 = vst [vmem:[#allocation2 + $0x4] sm:$0xf] %v230_v5 }
   0xb   :  { %188 = vmatmul.msk.f32.gmra.mxu0 %vm26_vm1, %v25_v3  ;;  %193 = vmatmul.msk.f32.gmra.mxu1 %vm26_vm1, %v190_v4 }
   0xc   :  { %v98_v11 = vld [vmem:[#allocation2] sm:$0xf] }
   0xd   :  { %v129_v12 = vld [vmem:[#allocation2 + $0x4] sm:$0xf] }
  0x80   :  { %v54_v6 = vpop.f32.mrf.mxu0  ;;  %v86_v7 = vpop.f32.mrf.mxu1 }
  0x81   :  { %92 = vst [vmem:[%s299_s3] sm:$0xff] %v54_v6 }
  0x82   :  { %194 = vst [vmem:[%s299_s3 + $0x10] sm:$0xff] %v86_v7 }
  0x88   :  { %v57_v8 = vpop.f32.mrf.mxu0  ;;  %v89_v9 = vpop.f32.mrf.mxu1 }
  0x89   :  { %93 = vst [vmem:[%s299_s3 + $0x8] sm:$0xf] %v57_v8  ;;  %196 = vmatpush.msk.msra.mxu2 %vm33_vm0, %v57_v8  ;;  %198 = vmatpush.msk.msra.mxu3 %vm33_vm0, %v89_v9 }
  0x8a   :  { %195 = vst [vmem:[%s299_s3 + $0x18] sm:$0xf] %v89_v9  ;;  %s232_s3 = smov 64  }
  0x8b   :  { %121 = vmatpush.msra.mxu2 %v54_v6  ;;  %148 = vmatpush.msra.mxu3 %v86_v7 }
  0x8c   :  { %197 = vmatmul.msk.f32.vlgmr.msra.gmra.mxu2 %vm99_vm2, %v97_v10  ;;  %199 = vmatmul.msk.f32.vlgmr.msra.gmra.mxu3 %vm99_vm2, %v97_v10 }
 0x10f   :  { %v123_v13 = vpop.f32.mrf.mxu2  ;;  %v150_v14 = vpop.f32.mrf.mxu3 }
 0x110   :  { %v126_v15 = vadd.f32 %v123_v13, %v98_v11  ;;  %v153_v16 = vadd.f32 %v150_v14, %v129_v12 }
 0x112   :  { %127 = vst [vmem:[#allocation2] sm:$0xf] %v126_v15 }
 0x113   :  { %154 = vst [vmem:[#allocation2 + $0x4] sm:$0xf] %v153_v16 }
 0x119   :  { %v158_v17 = vld [vmem:[#allocation2] sm:$0xf] }
 0x11a   :  { %v160_v18 = vmul.f32 0.33333334, %v158_v17  ;;  %v159_v19 = vld [vmem:[#allocation2 + $0x4] sm:$0xf] }
 0x11b   :  { %v161_v20 = vmul.f32 0.33333334, %v159_v19 }
 0x11c   :  { %162 = vst [vmem:[#allocation2] sm:$0xf] %v160_v18 }
 0x11d   :  { %163 = vst [vmem:[#allocation2 + $0x4] sm:$0xf] %v161_v20 }
 0x11e   :  { %178 = dma.vmem_to_hbm [thread:$0]  %s171_s8, 128, %s173_s10, [#allocation3], %s232_s3, %s232_s3, %s233_s11  }
 0x11f   :  { %228 = dma.done.wait [#allocation3], 128  }
 0x120   :  { %229 = vsyncadd [#allocation3], 4294967168 }
 0x121   :  { %185 = vsyncpa [#allocation3], 1 }

</bundles_post_ra>
